<compile_context>
chip_gen: v6e
topology: v6e:2x2x1
jax: 0.10.0
libtpu: 0.0.40
codegen_flags: <defaults>
</compile_context>

<pallas_src>
import jax
import jax.numpy as jnp
from jax.experimental import pallas as pl
from jax.experimental.pallas import tpu as pltpu


def convmlp_kernel(x_ref, w1_ref, b1_ref, w2_ref, b2_ref, w3_ref, b3_ref, o_ref):
    # x_ref: (C_in, TP) tile (channels on sublanes, pixels on lanes).
    # w*: (out, in) bf16 matrices;  b*: (out, 1) f32 biases.
    x = x_ref[...].astype(jnp.bfloat16)
    h = jnp.dot(w1_ref[...], x, preferred_element_type=jnp.float32) + b1_ref[...]
    h = jnp.maximum(h, 0.0)                                   # ReLU (layer 0)
    h = jnp.dot(w2_ref[...], h.astype(jnp.bfloat16),
                preferred_element_type=jnp.float32) + b2_ref[...]
    h = jnp.maximum(h, 0.0)                                   # ReLU (layer 1)
    o = jnp.dot(w3_ref[...], h.astype(jnp.bfloat16),
                preferred_element_type=jnp.float32) + b3_ref[...]
    o_ref[...] = o.astype(o_ref.dtype)                        # no ReLU on last layer


def _round_up(a, b):
    return (a + b - 1) // b * b


def _cdiv(a, b):
    return (a + b - 1) // b


def _vmem_capacity_bytes():
    # Physical VMEM per TensorCore; conservative fallback = v7x's 64 MiB.
    try:
        info = pltpu.get_tpu_info()
        cap = getattr(info, "vmem_capacity_bytes", None)
        if cap:
            return int(cap)
    except Exception:
        pass
    return 64 * 1024 * 1024


def conv_mlp_forward(x_nchw, params, *, max_spatial_tile=8192, out_dtype=None):
    """x_nchw: (N, C_in, H, W).  params: dict of w1,b1,w2,b2,w3,b3 (w: (out,in))."""
    N, C_in, H, W = x_nchw.shape
    w1, b1 = params["w1"], params["b1"]
    w2, b2 = params["w2"], params["b2"]
    w3, b3 = params["w3"], params["b3"]
    hidden = w1.shape[0]
    out_dim = w3.shape[0]
    out_dtype = jnp.dtype(out_dtype) if out_dtype is not None else x_nchw.dtype

    HW = H * W

    # Fixed fat spatial tile (128-aligned); never degrades for awkward H*W sizes.
    TP = min(int(max_spatial_tile), _round_up(HW, 128))
    TP = max(TP, 128)
    # v7x has 2 TensorCores: make sure the parallel grid has >= 2 steps if we can.
    if N * _cdiv(HW, TP) < 2 and TP > 128:
        TP = _round_up(_cdiv(TP, 2), 128)

    grid = (N, pl.cdiv(HW, TP))   # Pallas clips the ragged last spatial block.

    # (N, C, H, W) -> (N, C, HW): free view — no pad, no transpose, no extra HBM pass.
    x3d = x_nchw.reshape(N, C_in, HW)

    weight_map = lambda n, p: (0, 0)

    in_itemsize = x3d.dtype.itemsize
    out_itemsize = jnp.dtype(out_dtype).itemsize
    bytes_w = sum(a.size * a.dtype.itemsize for a in (w1, b1, w2, b2, w3, b3))
    bytes_in = x3d.size * in_itemsize
    bytes_out = N * out_dim * HW * out_itemsize
    flops = 2 * N * HW * (C_in * hidden + hidden * hidden + hidden * out_dim)

    # VMEM budget: double-buffered x/out tiles + weights, plus f32 intermediates
    # (h1/h2 scale with TP) and bf16 operand copies; generous 3x headroom, capped
    # at ~72% of the physical per-TC VMEM (v7x: 64 MiB; v5e/v6e: 128 MiB).
    tile_bytes = (2 * C_in * TP * in_itemsize          # x tile, double-buffered
                  + 2 * out_dim * TP * out_itemsize    # out tile, double-buffered
                  + 2 * bytes_w                        # weights, double-buffered
                  + 2 * hidden * TP * 4                # f32 intermediates h1/h2
                  + (C_in + 2 * hidden) * TP * 2)      # bf16 operand copies
    vmem_cap = _vmem_capacity_bytes()
    vmem_limit = int(min(int(0.72 * vmem_cap), max(8 * 1024 * 1024, 3 * tile_bytes)))

    out3d = pl.pallas_call(
        convmlp_kernel,
        out_shape=jax.ShapeDtypeStruct((N, out_dim, HW), out_dtype),
        grid_spec=pltpu.PrefetchScalarGridSpec(
            num_scalar_prefetch=0,
            grid=grid,
            in_specs=[
                pl.BlockSpec((None, C_in, TP), lambda n, p: (n, 0, p)),   # x tile
                pl.BlockSpec((hidden, C_in), weight_map),                 # w1 (bf16)
                pl.BlockSpec((hidden, 1), weight_map),                    # b1 (f32)
                pl.BlockSpec((hidden, hidden), weight_map),               # w2 (bf16)
                pl.BlockSpec((hidden, 1), weight_map),                    # b2 (f32)
                pl.BlockSpec((out_dim, hidden), weight_map),              # w3 (bf16)
                pl.BlockSpec((out_dim, 1), weight_map),                   # b3 (f32)
            ],
            out_specs=pl.BlockSpec((None, out_dim, TP), lambda n, p: (n, 0, p)),
        ),
        compiler_params=pltpu.CompilerParams(
            dimension_semantics=("parallel", "parallel"),   # shards across v7x's 2 TCs
            vmem_limit_bytes=vmem_limit,
        ),
        cost_estimate=pl.CostEstimate(
            flops=flops, transcendentals=0,
            bytes_accessed=bytes_in + bytes_w + bytes_out),
    )(x3d, w1, b1, w2, b2, w3, b3)

    # (N, out_dim, HW) -> (N, out_dim, H, W): free view.
    return out3d.reshape(N, out_dim, H, W)


def reference_forward(x_nchw, params):
    """Pure-JAX reference matching the PyTorch forward (1x1-conv MLP), mirroring
    the kernel's bf16 weight storage / bf16 operands with f32 accumulation."""
    N, C, H, W = x_nchw.shape
    x = x_nchw.reshape(N, C, H * W)

    def layer(w, b, a, relu):
        y = jnp.einsum("oc,ncp->nop",
                       w.astype(jnp.float32),
                       a.astype(jnp.bfloat16).astype(jnp.float32)) + b[None]
        return jnp.maximum(y, 0.0) if relu else y

    h = layer(params["w1"], params["b1"], x, True)
    h = layer(params["w2"], params["b2"], h, True)
    o = layer(params["w3"], params["b3"], h, False)
    out_dim = params["w3"].shape[0]
    return o.reshape(N, out_dim, H, W)


def init_params(key, input_dim, hidden_dim, output_dim):
    # num_layers = 3: [input_dim -> hidden -> hidden -> output_dim].
    # Conv2d 1x1 weight (out, in, 1, 1) stored here as (out, in), in bf16.
    ks = jax.random.split(key, 6)

    def lin(kw, kb, fan_in, fan_out):
        bound = 1.0 / jnp.sqrt(jnp.float32(fan_in))
        w = jax.random.uniform(kw, (fan_out, fan_in), jnp.float32, -bound, bound)
        b = jax.random.uniform(kb, (fan_out, 1), jnp.float32, -bound, bound)
        return w.astype(jnp.bfloat16), b

    w1, b1 = lin(ks[0], ks[1], input_dim, hidden_dim)
    w2, b2 = lin(ks[2], ks[3], hidden_dim, hidden_dim)
    w3, b3 = lin(ks[4], ks[5], hidden_dim, output_dim)
    return dict(w1=w1, b1=b1, w2=w2, b2=b2, w3=w3, b3=b3)


if __name__ == "__main__":
    key = jax.random.PRNGKey(0)
    k_x, k_p = jax.random.split(key)

    # Small shapes consistent with the module: batch=2, channels=4, spatial=16x16,
    # hidden=32, output=16, num_layers=3.
    N, C_in, H, W = 2, 4, 16, 16
    hidden_dim, output_dim = 32, 16

    x = jax.random.normal(k_x, (N, C_in, H, W), jnp.float32)
    params = init_params(k_p, C_in, hidden_dim, output_dim)

    out = conv_mlp_forward(x, params)
    out = jax.block_until_ready(out)

    ref = reference_forward(x, params)
    assert out.shape == (N, output_dim, H, W)
    assert jnp.allclose(out, ref, atol=1e-2, rtol=1e-2), "mismatch vs reference"

    print("KERNEL_OK")
</pallas_src>

<mosaic_0001>
module attributes {stable_mosaic.version = 11 : i64} {
  func.func @convmlp_kernel(%arg0: i32, %arg1: i32, %arg2: memref<1x4x256xf32, #tpu.memory_space<vmem>>, %arg3: memref<32x4xbf16, #tpu.memory_space<vmem>>, %arg4: memref<32x1xf32, #tpu.memory_space<vmem>>, %arg5: memref<32x32xbf16, #tpu.memory_space<vmem>>, %arg6: memref<32x1xf32, #tpu.memory_space<vmem>>, %arg7: memref<16x32xbf16, #tpu.memory_space<vmem>>, %arg8: memref<16x1xf32, #tpu.memory_space<vmem>>, %arg9: memref<1x16x256xf32, #tpu.memory_space<vmem>>) attributes {dimension_semantics = [#tpu.dimension_semantics<parallel>, #tpu.dimension_semantics<parallel>], iteration_bounds = array<i64: 2, 1>, scalar_prefetch = 0 : i64, scratch_operands = 0 : i64, tpu.core_type = #tpu.core_type<tc>, window_params = [{transform_indices = @transform_0, window_bounds = array<i64: 1, 4, 256>}, {pipeline_mode = #tpu.pipeline_mode<synchronous>, transform_indices = @transform_1, window_bounds = array<i64: 32, 4>}, {pipeline_mode = #tpu.pipeline_mode<synchronous>, transform_indices = @transform_2, window_bounds = array<i64: 32, 1>}, {pipeline_mode = #tpu.pipeline_mode<synchronous>, transform_indices = @transform_3, window_bounds = array<i64: 32, 32>}, {pipeline_mode = #tpu.pipeline_mode<synchronous>, transform_indices = @transform_4, window_bounds = array<i64: 32, 1>}, {pipeline_mode = #tpu.pipeline_mode<synchronous>, transform_indices = @transform_5, window_bounds = array<i64: 16, 32>}, {pipeline_mode = #tpu.pipeline_mode<synchronous>, transform_indices = @transform_6, window_bounds = array<i64: 16, 1>}, {transform_indices = @transform_7, window_bounds = array<i64: 1, 16, 256>}]} {
    %c0 = arith.constant 0 : index
    %c0_0 = arith.constant 0 : index
    %c0_1 = arith.constant 0 : index
    %0 = vector.load %arg2[%c0, %c0_0, %c0_1] : memref<1x4x256xf32, #tpu.memory_space<vmem>>, vector<1x4x256xf32>
    %1 = vector.shape_cast %0 : vector<1x4x256xf32> to vector<4x256xf32>
    %2 = arith.truncf %1 : vector<4x256xf32> to vector<4x256xbf16>
    %c0_2 = arith.constant 0 : index
    %c0_3 = arith.constant 0 : index
    %3 = vector.load %arg3[%c0_2, %c0_3] : memref<32x4xbf16, #tpu.memory_space<vmem>>, vector<32x4xbf16>
    %cst = arith.constant dense<0.000000e+00> : vector<32x256xf32>
    %4 = tpu.matmul %3, %2, %cst {dimension_numbers = #tpu.dot_dimension_numbers<[1], [0], [0], [1], [0, 0, 1, 1], [], []>} : vector<32x4xbf16>, vector<4x256xbf16>, vector<32x256xf32> -> vector<32x256xf32>
    %c0_4 = arith.constant 0 : index
    %c0_5 = arith.constant 0 : index
    %5 = vector.load %arg4[%c0_4, %c0_5] : memref<32x1xf32, #tpu.memory_space<vmem>>, vector<32x1xf32>
    %6 = vector.broadcast %5 : vector<32x1xf32> to vector<32x256xf32>
    %7 = arith.addf %4, %6 : vector<32x256xf32>
    %cst_6 = arith.constant 0.000000e+00 : f32
    %8 = vector.broadcast %cst_6 : f32 to vector<32x256xf32>
    %9 = arith.maximumf %7, %8 : vector<32x256xf32>
    %c0_7 = arith.constant 0 : index
    %c0_8 = arith.constant 0 : index
    %10 = vector.load %arg5[%c0_7, %c0_8] : memref<32x32xbf16, #tpu.memory_space<vmem>>, vector<32x32xbf16>
    %11 = arith.truncf %9 : vector<32x256xf32> to vector<32x256xbf16>
    %cst_9 = arith.constant dense<0.000000e+00> : vector<32x256xf32>
    %12 = tpu.matmul %10, %11, %cst_9 {dimension_numbers = #tpu.dot_dimension_numbers<[1], [0], [0], [1], [0, 0, 1, 1], [], []>} : vector<32x32xbf16>, vector<32x256xbf16>, vector<32x256xf32> -> vector<32x256xf32>
    %c0_10 = arith.constant 0 : index
    %c0_11 = arith.constant 0 : index
    %13 = vector.load %arg6[%c0_10, %c0_11] : memref<32x1xf32, #tpu.memory_space<vmem>>, vector<32x1xf32>
    %14 = vector.broadcast %13 : vector<32x1xf32> to vector<32x256xf32>
    %15 = arith.addf %12, %14 : vector<32x256xf32>
    %cst_12 = arith.constant 0.000000e+00 : f32
    %16 = vector.broadcast %cst_12 : f32 to vector<32x256xf32>
    %17 = arith.maximumf %15, %16 : vector<32x256xf32>
    %c0_13 = arith.constant 0 : index
    %c0_14 = arith.constant 0 : index
    %18 = vector.load %arg7[%c0_13, %c0_14] : memref<16x32xbf16, #tpu.memory_space<vmem>>, vector<16x32xbf16>
    %19 = arith.truncf %17 : vector<32x256xf32> to vector<32x256xbf16>
    %cst_15 = arith.constant dense<0.000000e+00> : vector<16x256xf32>
    %20 = tpu.matmul %18, %19, %cst_15 {dimension_numbers = #tpu.dot_dimension_numbers<[1], [0], [0], [1], [0, 0, 1, 1], [], []>} : vector<16x32xbf16>, vector<32x256xbf16>, vector<16x256xf32> -> vector<16x256xf32>
    %c0_16 = arith.constant 0 : index
    %c0_17 = arith.constant 0 : index
    %21 = vector.load %arg8[%c0_16, %c0_17] : memref<16x1xf32, #tpu.memory_space<vmem>>, vector<16x1xf32>
    %22 = vector.broadcast %21 : vector<16x1xf32> to vector<16x256xf32>
    %23 = arith.addf %20, %22 : vector<16x256xf32>
    %c0_18 = arith.constant 0 : index
    %c0_19 = arith.constant 0 : index
    %c0_20 = arith.constant 0 : index
    %24 = vector.load %arg9[%c0_18, %c0_19, %c0_20] : memref<1x16x256xf32, #tpu.memory_space<vmem>>, vector<1x16x256xf32>
    %25 = vector.shape_cast %24 : vector<1x16x256xf32> to vector<16x256xf32>
    %26 = vector.shape_cast %23 : vector<16x256xf32> to vector<1x16x256xf32>
    tpu.vector_store %arg9[%c0_18, %c0_19, %c0_20], %26 {strides = array<i32>} : memref<1x16x256xf32, #tpu.memory_space<vmem>>, vector<1x16x256xf32>,
    return
  }
  func.func @transform_0(%arg0: i32, %arg1: i32) -> (i32, i32, i32) {
    %c0_i32 = arith.constant 0 : i32
    %c0_i32_0 = arith.constant 0 : i32
    return %arg0, %c0_i32, %arg1 : i32, i32, i32
  }
  func.func @transform_1(%arg0: i32, %arg1: i32) -> (i32, i32) {
    %c0_i32 = arith.constant 0 : i32
    %c0_i32_0 = arith.constant 0 : i32
    %c0_i32_1 = arith.constant 0 : i32
    return %c0_i32, %c0_i32_0 : i32, i32
  }
  func.func @transform_2(%arg0: i32, %arg1: i32) -> (i32, i32) {
    %c0_i32 = arith.constant 0 : i32
    %c0_i32_0 = arith.constant 0 : i32
    %c0_i32_1 = arith.constant 0 : i32
    return %c0_i32, %c0_i32_0 : i32, i32
  }
  func.func @transform_3(%arg0: i32, %arg1: i32) -> (i32, i32) {
    %c0_i32 = arith.constant 0 : i32
    %c0_i32_0 = arith.constant 0 : i32
    %c0_i32_1 = arith.constant 0 : i32
    return %c0_i32, %c0_i32_0 : i32, i32
  }
  func.func @transform_4(%arg0: i32, %arg1: i32) -> (i32, i32) {
    %c0_i32 = arith.constant 0 : i32
    %c0_i32_0 = arith.constant 0 : i32
    %c0_i32_1 = arith.constant 0 : i32
    return %c0_i32, %c0_i32_0 : i32, i32
  }
  func.func @transform_5(%arg0: i32, %arg1: i32) -> (i32, i32) {
    %c0_i32 = arith.constant 0 : i32
    %c0_i32_0 = arith.constant 0 : i32
    %c0_i32_1 = arith.constant 0 : i32
    return %c0_i32, %c0_i32_0 : i32, i32
  }
  func.func @transform_6(%arg0: i32, %arg1: i32) -> (i32, i32) {
    %c0_i32 = arith.constant 0 : i32
    %c0_i32_0 = arith.constant 0 : i32
    %c0_i32_1 = arith.constant 0 : i32
    return %c0_i32, %c0_i32_0 : i32, i32
  }
  func.func @transform_7(%arg0: i32, %arg1: i32) -> (i32, i32, i32) {
    %c0_i32 = arith.constant 0 : i32
    %c0_i32_0 = arith.constant 0 : i32
    return %arg0, %c0_i32, %arg1 : i32, i32, i32
  }
}

</mosaic_0001>

<bundles_post_ra>
// kernel: tpu_custom_call.1
= control target key start
LH: loop header
LB: loop body
LE: loop exit
PB: predicated region body
PF: predicated region fallthrough
CT: control target
= control target key end

     0   :  { %12 = vsyncpa [#allocation3], 0  ;;  %s1089_s0 = inlined_call_operand.vmem [shape: f32[2,4,256], index: 0, kind: input, shape index: {}]   ;;  %s1090_s1 = inlined_call_operand.vmem [shape: bf16[32,4], index: 1, kind: input, shape index: {}]   ;;  %s1091_s2 = inlined_call_operand.vmem [shape: f32[32,1], index: 2, kind: input, shape index: {}]   ;;  %s1092_s3 = inlined_call_operand.vmem [shape: bf16[32,32], index: 3, kind: input, shape index: {}]   ;;  %s1093_s4 = inlined_call_operand.vmem [shape: f32[32,1], index: 4, kind: input, shape index: {}]   ;;  %s1094_s5 = inlined_call_operand.vmem [shape: bf16[16,32], index: 5, kind: input, shape index: {}]   ;;  %s1095_s6 = inlined_call_operand.vmem [shape: f32[16,1], index: 6, kind: input, shape index: {}]   ;;  %s1096_s7 = inlined_call_operand.hbm [shape: f32[2,16,256], index: 7, kind: output, shape index: {}]  }
   0x1   :  { %14 = vsyncpa [#allocation3 + $0x1], 0  ;;  %s920_s24 = smov 0   ;;  %s922_s25 = smov 0  }
   0x2   :  { %s924_s26 = smov 0   ;;  %s926_s27 = smov 0  }
   0x3   :  { %s928_s28 = smov 0   ;;  %s930_s29 = smov 0  }
   0x4 LB: > { %s706_s30 = sadd.s32 4294967295, %s874_s29   ;;  %s707_s8 = sadd.s32 4294967294, %s874_s29   ;;  %s874_s29 = sphi %s930_s29, %s20_s29   ;;  %s870_s28 = sphi %s928_s28, %s1103_s28   ;;  %s866_s27 = sphi %s926_s27, %s1102_s27   ;;  %s862_s26 = sphi %s924_s26, %s1101_s26   ;;  %s858_s25 = sphi %s922_s25, %s1100_s25   ;;  %s854_s24 = sphi %s920_s24, %s1099_s24  }
   0x5   : > { %s32_s9 = sadd.s32 1, %s870_s28  ;;  %s195_s10 = sadd.s32 1, %s862_s26 }
   0x6   : > { %p34_p0 = scmp.ge.s32.totalorder %s32_s9, 2  ;;  %p205_p1 = scmp.ne.s32.totalorder %s862_s26, %s858_s25 }
   0x7   : > { %p206_p2 = scmp.eq.s32.totalorder %s706_s30, 1  ;;  %p211_p3 = scmp.ne.s32.totalorder %s858_s25, %s854_s24 }
   0x8   : > { %s1105_s9 = smov (%p34_p0, %s32_s9), 0  ;;  %p212_p5 = scmp.eq.s32.totalorder %s707_s8, 1 }
   0x9   : > { %p960_p4 = por %p206_p2, %p205_p1  ;;  %s190_s12 = ssub.s32 %s870_s28, %s1105_s9 }
   0xa   : > { %p710_p6 = scmp.ge.s32.totalorder %s874_s29, 1  ;;  %p193_p7 = scmp.eq.s32.totalorder %s190_s12, 0 }
   0xb   : > { %p967_p8 = por %p212_p5, %p211_p3  ;;  %p261_p9 = scmp.lt.s32.totalorder %s874_s29, 3 }
   0xc   : > { %s973_s14 = scalar_select %p193_p7, %s862_s26, %s195_s10  }
   0xd   : > { %p262_p10 = pnand %p710_p6, %p261_p9 }
   0xe   : > { %p298_p11 = scmp.lt.s32.totalorder (!%p262_p10), %s866_s27, 1  ;;  %s294_s30 = sand.u32 (!%p262_p10), 1, %s858_s25  }
   0xf   : > { %265 = sbr.rel (%p262_p10) target bundleno = 690 (0x2b2), region = 48  ;;  %s731_s16 = sshll.u32 (!%p262_p10), %s866_s27, 9 }
  0x10   : > { %s1042_s18 = scalar_lea.hbm (!%p262_p10), %s1096_s7, %s731_s16  ;;  %s1044_s19 = scalar_lea.sflag (!%p262_p10), [#allocation3], %s294_s30 }
  0x14   : > { %v876_v0 = vmov 0   ;;  %s299_s15 = scalar_select %p298_p11, %s866_s27, 1  ;;  %v321_v1 = vld [vmem:[%s1091_s2 + $0x10] sm:$0xff]  ;;  %v319_v2 = vld [vmem:[%s1091_s2] sm:$0xff]  ;;  %v322_v3 = vld [vmem:[%s1091_s2 + $0x18] sm:$0xff]  ;;  %vm360_vm0 = vcmask 1041408  }
  0x15   : > { %399 = vmatprep.mubr.bf16.mxu0 %v876_v0  ;;  %790 = vset.pattern.permute.xlu0 %v876_v0  ;;  %v320_v4 = vld [vmem:[%s1091_s2 + $0x8] sm:$0xff]  ;;  %v438_v8 = vld [vmem:[%s1093_s4 + $0x10] sm:$0xff]  ;;  %v439_v11 = vld [vmem:[%s1093_s4 + $0x18] sm:$0xff]  ;;  %vm353_vm1 = vcmask 31744   ;;  %vm470_vm2 = vcmask 261120  }
  0x16   : > { %791 = vset.pattern.permute.xlu1 %v876_v0  ;;  %509 = vmatprep.mubr.bf16.mxu1 %v876_v0  ;;  %s730_s20 = sshll.u32 %s299_s15, 3  ;;  %v793_v12 = vld [vmem:[%s1090_s1] sm:$0xff]   ;;  %v437_v14 = vld [vmem:[%s1093_s4 + $0x8] sm:$0xff] }
  0x17   : > { %335 = vperm.xlu0 %790, %v321_v1   ;;  %325 = vperm.xlu1 %791, %v319_v2   ;;  %s305_s8 = scalar_lea.vmem %s1089_s0, %s730_s20  ;;  %v436_v13 = vld [vmem:[%s1093_s4] sm:$0xff]  ;;  %v545_v16 = vld [vmem:[%s1095_s6 + $0x8] sm:$0xff]  ;;  %s877_s20 = smov [#allocation2]  }
  0x18   : > { %v309_v5 = vld [vmem:[%s305_s8] sm:$0xff]  ;;  %v794_v17 = vld [vmem:[%s1090_s1 + $0x8] sm:$0xff]   ;;  %s711_s8 = sshll.u32 %s294_s30, 5  ;;  %s802_s21 = sshll.u32 %s877_s20, 4  ;;  %s803_s21 = int_to_ptr.vmem [resolvable:$false] %s802_s21 }
  0x19   : > { %v311_v6 = vcombine.high %v309_v5, %v309_v5  ;;  %v313_v7 = vpack.c.bf16 %v309_v5, %v309_v5  ;;  %v544_v15 = vld [vmem:[%s1095_s6] sm:$0xff]  ;;  %v796_v51 = vld [vmem:[%s1092_s3 + $0x8] sm:$0xff]   ;;  %s296_s10 = scalar_lea.vmem [#allocation2], %s711_s8  ;;  %s804_s22 = scalar_lea.vmem %s803_s21, 1024 }
  0x1a   : > { %v795_v50 = vld [vmem:[%s1092_s3] sm:$0xff]   ;;  %s627_s12 = sshll.u32 %s296_s10, 4  ;;  %s1037_s12 = int_to_ptr.vmem [resolvable:$true] %s627_s12 }
  0x1b   : > { %340 = vperm.xlu0 %790, %v322_v3   ;;  %330 = vperm.xlu1 %791, %v320_v4   ;;  %v314_v9 = vpack.c.bf16 %v311_v6, %v311_v6  ;;  %v362_v10 = vsel %vm360_vm0, %v313_v7, 0  ;;  %s798_s27 = scalar_lea.vmem %s1037_s12, 512  ;;  %p805_p1 = scmp.lt.s32.totalorder %s1037_s12, %s803_s21 }
  0x1c   : > { %p799_p12 = scmp.ne.s32.totalorder %s1037_s12, %s798_s27  ;;  %p806_p2 = scmp.lt.s32.totalorder %s804_s22, %s798_s27 }
  0x1d   : > { %716 = vmatprep.subr.msk.bf16.mxu0 %vm360_vm0, %v314_v9 }
  0x1e   : > { %382 = vmatpush1.bf16.msra.mxu0 %v362_v10  ;;  %p800_p13 = pnand %p799_p12, %p960_p4  ;;  %p807_p3 = por %p806_p2, %p805_p1 }
  0x1f   : > { %452 = vperm.xlu0 %790, %v438_v8   ;;  %457 = vperm.xlu1 %791, %v439_v11  }
  0x20   : > { %p801_p0 = pneg %p800_p13 }
  0x21   : > { %717 = vmatmul.mubr.msk.bf16.vlgmr.msra.gmra.mxu0 %vm353_vm1, %v793_v12 }
  0x22   : > { %409 = vmatprep.mubr.bf16.mxu0 %v876_v0  ;;  %p808_p5 = pnand %p807_p3, %p801_p0 }
  0x23   : > { %442 = vperm.xlu0 %790, %v436_v13   ;;  %447 = vperm.xlu1 %791, %v437_v14  }
  0x27   : > { %548 = vperm.xlu0 %790, %v544_v15   ;;  %553 = vperm.xlu1 %791, %v545_v16  }
  0x29   : > { %718 = vmatmul.mubr.msk.bf16.gmra.mxu0 %vm353_vm1, %v794_v17 }
  0x2a   : > { %596 = vmatprep.mubr.bf16.mxu0 %v876_v0 }
  0x92   : > { %v336_v21 = vpop.permute.xlu0 %335  ;;  %v326_v22 = vpop.permute.xlu1 %325 }
  0x96   : > { %v341_v26 = vpop.permute.xlu0 %340  ;;  %v331_v27 = vpop.permute.xlu1 %330 }
  0x9a   : > { %v458_v55 = vpop.permute.xlu1 %457  ;;  %v453_v57 = vpop.permute.xlu0 %452 }
  0x9e   : > { %v448_v60 = vpop.permute.xlu1 %447 }
  0xe1   : > { %v401_v18 = vpop.f32.mrf.mxu0 }
  0xe2   : > { %v402_v41 = vadd.f32 %v401_v18, %v326_v22 }
  0xe3   : > { %v403_v19 = vpop.f32.mrf.mxu0 }
  0xe4   : > { %v404_v34 = vadd.f32 %v403_v19, %v326_v22  ;;  %v420_v48 = vmax.f32 %v402_v41, 0.0 }
  0xe5   : > { %v405_v20 = vpop.f32.mrf.mxu0 }
  0xe6   : > { %v406_v36 = vadd.f32 %v405_v20, %v331_v27  ;;  %v421_v43 = vmax.f32 %v404_v34, 0.0  ;;  %v797_v20 = vld [vmem:[%s1094_s5] sm:$0xff]  }
  0xe7   : > { %v407_v23 = vpop.f32.mrf.mxu0 }
  0xe8   : > { %v408_v29 = vadd.f32 %v407_v23, %v331_v27  ;;  %v422_v45 = vmax.f32 %v406_v36, 0.0 }
  0xe9   : > { %v411_v24 = vpop.f32.mrf.mxu0 }
  0xea   : > { %v412_v32 = vadd.f32 %v411_v24, %v336_v21  ;;  %v423_v38 = vmax.f32 %v408_v29, 0.0  ;;  %v432_v49 = vpack.c.bf16 %v422_v45, %v420_v48 }
  0xeb   : > { %v413_v25 = vpop.f32.mrf.mxu0 }
  0xec   : > { %v414_v30 = vadd.f32 %v413_v25, %v336_v21  ;;  %v424_v42 = vmax.f32 %v412_v32, 0.0  ;;  %v433_v47 = vpack.c.bf16 %v423_v38, %v421_v43 }
  0xed   : > { %v415_v28 = vpop.f32.mrf.mxu0 }
  0xee   : > { %v416_v31 = vadd.f32 %v415_v28, %v341_v26  ;;  %v425_v39 = vmax.f32 %v414_v30, 0.0 }
  0xef   : > { %v417_v33 = vpop.f32.mrf.mxu0 }
  0xf0   : > { %v418_v35 = vadd.f32 %v417_v33, %v341_v26  ;;  %v426_v37 = vmax.f32 %v416_v31, 0.0  ;;  %v554_v26 = vpop.permute.xlu1 %553 }
  0xf2   : > { %v427_v40 = vmax.f32 %v418_v35, 0.0  ;;  %v434_v46 = vpack.c.bf16 %v426_v37, %v424_v42 }
  0xf4   : > { %v435_v44 = vpack.c.bf16 %v427_v40, %v425_v39 }
  0xf6   : > { %489 = vmatprep.subr.bf16.mxu1 %v435_v44 }
  0xf7   : > { %490 = vmatpush1.bf16.msra.mxu1 %v434_v46 }
  0xf8   : > { %491 = vmatprep.subr.bf16.mxu1 %v433_v47 }
  0xfb   : > { %492 = vmatpush1.bf16.msra.mxu1 %v432_v49 }
  0xfe   : > { %721 = vmatmul.mubr.msk.bf16.vlgmr.msra.gmra.mxu1 %vm470_vm2, %v795_v50 }
  0xff   : > { %519 = vmatprep.mubr.bf16.mxu1 %v876_v0  ;;  %v443_v0 = vpop.permute.xlu0 %442 }
 0x103   : > { %v549_v21 = vpop.permute.xlu0 %548 }
 0x106   : > { %722 = vmatmul.mubr.msk.bf16.gmra.mxu1 %vm470_vm2, %v796_v51 }
 0x1be   : > { %v511_v52 = vpop.f32.mrf.mxu1 }
 0x1bf   : > { %v512_v11 = vadd.f32 %v511_v52, %v443_v0 }
 0x1c0   : > { %v513_v53 = vpop.f32.mrf.mxu1 }
 0x1c1   : > { %v514_v4 = vadd.f32 %v513_v53, %v443_v0  ;;  %v530_v18 = vmax.f32 %v512_v11, 0.0 }
 0x1c2   : > { %v515_v54 = vpop.f32.mrf.mxu1 }
 0x1c3   : > { %v516_v6 = vadd.f32 %v515_v54, %v448_v60  ;;  %v531_v13 = vmax.f32 %v514_v4, 0.0 }
 0x1c4   : > { %v517_v56 = vpop.f32.mrf.mxu1 }
 0x1c5   : > { %v518_v62 = vadd.f32 %v517_v56, %v448_v60  ;;  %v532_v15 = vmax.f32 %v516_v6, 0.0 }
 0x1c6   : > { %v521_v58 = vpop.f32.mrf.mxu1 }
 0x1c7   : > { %v522_v2 = vadd.f32 %v521_v58, %v453_v57  ;;  %v533_v8 = vmax.f32 %v518_v62, 0.0  ;;  %v540_v19 = vpack.c.bf16 %v532_v15, %v530_v18 }
 0x1c8   : > { %v523_v59 = vpop.f32.mrf.mxu1 }
 0x1c9   : > { %v524_v63 = vadd.f32 %v523_v59, %v453_v57  ;;  %v534_v12 = vmax.f32 %v522_v2, 0.0  ;;  %v541_v17 = vpack.c.bf16 %v533_v8, %v531_v13 }
 0x1ca   : > { %v525_v61 = vpop.f32.mrf.mxu1 }
 0x1cb   : > { %v526_v1 = vadd.f32 %v525_v61, %v458_v55  ;;  %v535_v9 = vmax.f32 %v524_v63, 0.0 }
 0x1cc   : > { %v527_v3 = vpop.f32.mrf.mxu1 }
 0x1cd   : > { %v528_v5 = vadd.f32 %v527_v3, %v458_v55  ;;  %v536_v7 = vmax.f32 %v526_v1, 0.0 }
 0x1cf   : > { %v537_v10 = vmax.f32 %v528_v5, 0.0  ;;  %v542_v16 = vpack.c.bf16 %v536_v7, %v534_v12 }
 0x1d1   : > { %v543_v14 = vpack.c.bf16 %v537_v10, %v535_v9 }
 0x1d3   : > { %576 = vmatprep.subr.bf16.mxu0 %v543_v14 }
 0x1d4   : > { %577 = vmatpush1.bf16.msra.mxu0 %v542_v16 }
 0x1d5   : > { %578 = vmatprep.subr.bf16.mxu0 %v541_v17 }
 0x1d8   : > { %579 = vmatpush1.bf16.msra.mxu0 %v540_v19 }
 0x1db   : > { %724 = vmatmul.mubr.msk.bf16.vlgmr.msra.gmra.mxu0 %vm470_vm2, %v797_v20 }
 0x29b   : > { %v598_v22 = vpop.f32.mrf.mxu0 }
 0x29c   : > { %v599_v23 = vadd.f32 %v598_v22, %v549_v21 }
 0x29d   : > { %v600_v24 = vpop.f32.mrf.mxu0 }
 0x29e   : > { %607 = vst [vmem:[%s296_s10] sm:$0xff] %v599_v23  ;;  %v601_v25 = vadd.f32 %v600_v24, %v549_v21 }
 0x29f   : > { %v602_v27 = vpop.f32.mrf.mxu0 }
 0x2a0   : > { %608 = vst [vmem:[%s296_s10 + $0x8] sm:$0xff] %v601_v25  ;;  %v603_v28 = vadd.f32 %v602_v27, %v554_v26 }
 0x2a1   : > { %v604_v29 = vpop.f32.mrf.mxu0 }
 0x2a2   : > { %609 = vst [vmem:[%s296_s10 + $0x10] sm:$0xff] %v603_v28  ;;  %v605_v30 = vadd.f32 %v604_v29, %v554_v26 }
 0x2a4   : > { %610 = vst [vmem:[%s296_s10 + $0x18] sm:$0xff] %v605_v30 }
 0x2a5   : > { %811 = shalt.err (!%p808_p5)
}
 0x2a6   : > { %s812_s23 = scalar_lea.hbm %s1042_s18, 512  ;;  %s816_s10 = scalar_lea.hbm %s1096_s7, 1024 }
 0x2a7   : > { %p813_p6 = scmp.ne.s32.totalorder %s1042_s18, %s812_s23  ;;  %p817_p10 = scmp.lt.s32.totalorder %s1042_s18, %s1096_s7 }
 0x2a8   : > { %p818_p11 = scmp.lt.s32.totalorder %s816_s10, %s812_s23 }
 0x2a9   : > { %p814_p7 = pnand %p813_p6, %p960_p4 }
 0x2aa   : > { %p819_p12 = por %p818_p11, %p817_p10 }
 0x2ab   : > { %p815_p9 = pneg %p814_p7 }
 0x2ad   : > { %p820_p13 = pnand %p819_p12, %p815_p9 }
 0x2af   : > { %823 = shalt.err (!%p820_p13)
}
 0x2b0   : > { %s878_s17 = smov 256   ;;  %s879_s27 = smov 16  }
 0x2b1   : > { %732 = dma.vmem_to_hbm [thread:$0]  (%p960_p4), %s1037_s12, 512, %s1042_s18, %s1044_s19, %s878_s17, %s878_s17, %s879_s27  }
 0x2b2 PF: > { %p738_p0 = scmp.ge.s32.totalorder %s874_s29, 2  ;;  %s642_s20 = sand.u32 1, %s854_s24  }
 0x2b3   : > { %s643_s21 = scalar_lea.sflag [#allocation3], %s642_s20 }
 0x2b4   : > { %p735_p1 = pnand %p738_p0, %p967_p8 }
 0x2b6   : > { %p736_p2 = pneg %p735_p1 }
 0x2b8   : > { %849 = dma.done.wait (%p736_p2), %s643_s21, 512  }
 0x2b9   : > { %851 = vsyncadd (%p736_p2), %s643_s21, 4294966784  ;;  %s20_s29 = sadd.s32 1, %s874_s29   ;;  %s1099_s24 = smov %s858_s25 }
 0x2ba   : > { %p17_p3 = scmp.ge.s32.totalorder %s20_s29, 4   ;;  %s1100_s25 = smov %s862_s26 }
 0x2bb   : > { %s1101_s26 = smov %s973_s14  ;;  %s1102_s27 = smov %s870_s28 }
 0x2bc   : > { %s1103_s28 = smov %s1105_s9  ;;  %19 = sbr.rel (!%p17_p3) target bundleno = 4 (0x4), region = 83 }
 0x2c1   :  { %648 = vsyncpa [#allocation3], 1 }
 0x2c2   :  { %650 = vsyncpa [#allocation3 + $0x1], 1 }

</bundles_post_ra>
